<compile_context>
chip_gen: v6e
topology: v6e:2x2x1
jax: 0.10.0
libtpu: 0.0.40
codegen_flags: <defaults>
</compile_context>

<pallas_src>
import functools

import jax
import jax.numpy as jnp
from jax.experimental import pallas as pl
from jax.experimental.pallas import tpu as pltpu


def _disc_kernel(x_ref, w_ref, b_ref, out_ref):
    # Whole collapsed network: one dot + bias + sigmoid epilogue.
    logits = jnp.dot(x_ref[...], w_ref[...],
                     preferred_element_type=jnp.float32) + b_ref[...]
    out_ref[...] = jax.nn.sigmoid(logits)


def _choose_block_rows(n_rows, row_bytes):
    """Rows per grid step for the (n_rows, width) activation slab."""
    if n_rows <= 512:
        # Tiny batch: single full-extent block (always layout-legal, no waste).
        return n_rows
    # Target ~2 MiB of x per step (4 MiB double-buffered) -> amortizes the
    # ~0.35 us per-step pipeline overhead on every TPU generation while
    # staying far under v5e's 16 MiB scoped-VMEM default.
    target_bytes = 2 * 1024 * 1024
    sweet = max(128, (target_bytes // row_bytes) // 128 * 128)
    # Keep >= 2 grid steps so v7x's two TensorCores both get work on the
    # "parallel" batch axis.
    half = ((-(-n_rows // 2)) + 127) // 128 * 128
    return max(128, min(sweet, half))


@jax.jit
def discriminator_dc_forward(x, params):
    """x: (B, dim) f32. params: w1..w5 with shape (in, out), b1..b5 (1, out).

    Returns (valid, label), each (B, 1) f32, matching the PyTorch forward.
    """
    B, dim = x.shape

    # ---- collapse the whole activation-free network into one affine map ----
    w45 = jnp.concatenate([params["w4"], params["w5"]], axis=1)      # (32, 2)
    b45 = jnp.concatenate([params["b4"], params["b5"]], axis=1)      # (1, 2)
    w_all = (params["w1"] @ params["w2"] @ params["w3"] @ w45)       # (dim, 2)
    b_hid = (params["b1"] @ params["w2"] + params["b2"]) @ params["w3"] \
        + params["b3"]                                               # (1, 32)
    b_all = b_hid @ w45 + b45                                        # (1, 2)

    x_in = x.astype(jnp.float32)
    w_all = w_all.astype(jnp.float32)
    b_all = b_all.astype(jnp.float32)

    # ---- lane-density fold: view x as (B/fold, dim*fold), block-diag weight --
    fold = 1
    if dim < 128 and 128 % dim == 0:
        f = 128 // dim
        if B % f == 0:
            fold = f
    n_rows = B // fold
    width = dim * fold
    n_out = 2 * fold

    if fold > 1:
        x_in = x_in.reshape(n_rows, width)                # contiguous -> free
        w_k = jnp.kron(jnp.eye(fold, dtype=jnp.float32), w_all)   # (width, 2*fold)
        b_k = jnp.tile(b_all, (1, fold))                            # (1, 2*fold)
    else:
        w_k, b_k = w_all, b_all

    # ---- tiling: big batch tile, ragged last block (no padding copy) --------
    block_r = _choose_block_rows(n_rows, width * 4)
    nb = pl.cdiv(n_rows, block_r)

    batch_map = lambda i: (i, 0)
    rep_map = lambda i: (0, 0)

    out = pl.pallas_call(
        _disc_kernel,
        out_shape=jax.ShapeDtypeStruct((n_rows, n_out), jnp.float32),
        grid=(nb,),
        in_specs=[
            pl.BlockSpec((block_r, width), batch_map),   # x tile (streamed)
            pl.BlockSpec((width, n_out), rep_map),       # collapsed weight (resident)
            pl.BlockSpec((1, n_out), rep_map),           # collapsed bias (resident)
        ],
        out_specs=pl.BlockSpec((block_r, n_out), batch_map),
        compiler_params=pltpu.CompilerParams(
            dimension_semantics=("parallel",)),          # megacore-friendly
    )(x_in, w_k, b_k)

    out = out.reshape(B, 2)                              # contiguous -> free
    return out[:, 0:1], out[:, 1:2]


def init_params(key, dim):
    """Deterministic synthetic init (PyTorch-Linear-like uniform fan-in bound)."""
    sizes = [(dim, 256), (256, 128), (128, 32), (32, 1), (32, 1)]
    params = {}
    keys = jax.random.split(key, 2 * len(sizes))
    for idx, (fan_in, fan_out) in enumerate(sizes):
        bound = 1.0 / jnp.sqrt(fan_in)
        w = jax.random.uniform(keys[2 * idx], (fan_in, fan_out),
                               minval=-bound, maxval=bound, dtype=jnp.float32)
        b = jax.random.uniform(keys[2 * idx + 1], (1, fan_out),
                               minval=-bound, maxval=bound, dtype=jnp.float32)
        params[f"w{idx + 1}"] = w
        params[f"b{idx + 1}"] = b
    return params


def reference_forward(x, params):
    """Layer-by-layer f32 reference matching the PyTorch module exactly."""
    h = x @ params["w1"] + params["b1"]
    h = h @ params["w2"] + params["b2"]
    h = h @ params["w3"] + params["b3"]
    valid = jax.nn.sigmoid(h @ params["w4"] + params["b4"])
    label = jax.nn.sigmoid(h @ params["w5"] + params["b5"])
    return valid, label


def _check(x, params, atol=1e-4):
    v, l = discriminator_dc_forward(x, params)
    jax.block_until_ready((v, l))
    v_ref, l_ref = reference_forward(x, params)
    assert v.shape == (x.shape[0], 1) and l.shape == (x.shape[0], 1)
    assert jnp.allclose(v, v_ref, atol=atol, rtol=atol), "valid mismatch"
    assert jnp.allclose(l, l_ref, atol=atol, rtol=atol), "label mismatch"


if __name__ == "__main__":
    key = jax.random.PRNGKey(0)
    k_p, k1, k2, k3 = jax.random.split(key, 4)

    DIM = 64                      # the module's `dim` ctor arg
    params = init_params(k_p, DIM)

    # Small batch (fold=2, single full-extent block, no padding).
    x_small = jax.random.normal(k1, (8, DIM), dtype=jnp.float32)
    _check(x_small, params)

    # Odd batch (fold disabled -> width 64 path, single block).
    x_odd = jax.random.normal(k2, (7, DIM), dtype=jnp.float32)
    _check(x_odd, params)

    # Larger batch: multi-step grid with a ragged last block
    # (B=1026 -> folded rows=513 -> block 384, grid=2, last block ragged).
    x_big = jax.random.normal(k3, (1026, DIM), dtype=jnp.float32)
    _check(x_big, params)

    print("KERNEL_OK")
</pallas_src>

<mosaic_0001>
module attributes {stable_mosaic.version = 11 : i64} {
  func.func @_disc_kernel(%arg0: i32, %arg1: memref<4x128xf32, #tpu.memory_space<vmem>>, %arg2: memref<128x4xf32, #tpu.memory_space<vmem>>, %arg3: memref<1x4xf32, #tpu.memory_space<vmem>>, %arg4: memref<4x4xf32, #tpu.memory_space<vmem>>) attributes {dimension_semantics = [#tpu.dimension_semantics<parallel>], iteration_bounds = array<i64: 1>, scalar_prefetch = 0 : i64, scratch_operands = 0 : i64, tpu.core_type = #tpu.core_type<tc>, window_params = [{transform_indices = @transform_0, window_bounds = array<i64: 4, 128>}, {pipeline_mode = #tpu.pipeline_mode<synchronous>, transform_indices = @transform_1, window_bounds = array<i64: 128, 4>}, {pipeline_mode = #tpu.pipeline_mode<synchronous>, transform_indices = @transform_2, window_bounds = array<i64: 1, 4>}, {transform_indices = @transform_3, window_bounds = array<i64: 4, 4>}]} {
    %c0 = arith.constant 0 : index
    %c0_0 = arith.constant 0 : index
    %0 = vector.load %arg1[%c0, %c0_0] : memref<4x128xf32, #tpu.memory_space<vmem>>, vector<4x128xf32>
    %c0_1 = arith.constant 0 : index
    %c0_2 = arith.constant 0 : index
    %1 = vector.load %arg2[%c0_1, %c0_2] : memref<128x4xf32, #tpu.memory_space<vmem>>, vector<128x4xf32>
    %cst = arith.constant dense<0.000000e+00> : vector<4x4xf32>
    %2 = tpu.matmul %0, %1, %cst {dimension_numbers = #tpu.dot_dimension_numbers<[1], [0], [0], [1], [0, 0, 1, 1], [], []>} : vector<4x128xf32>, vector<128x4xf32>, vector<4x4xf32> -> vector<4x4xf32>
    %c0_3 = arith.constant 0 : index
    %c0_4 = arith.constant 0 : index
    %3 = vector.load %arg3[%c0_3, %c0_4] : memref<1x4xf32, #tpu.memory_space<vmem>>, vector<1x4xf32>
    %4 = vector.broadcast %3 : vector<1x4xf32> to vector<4x4xf32>
    %5 = arith.addf %2, %4 : vector<4x4xf32>
    %6 = arith.negf %5 : vector<4x4xf32>
    %7 = math.exp %6 : vector<4x4xf32>
    %cst_5 = arith.constant 1.000000e+00 : f32
    %8 = vector.broadcast %cst_5 : f32 to vector<4x4xf32>
    %9 = arith.addf %8, %7 : vector<4x4xf32>
    %10 = arith.divf %8, %9 : vector<4x4xf32>
    %c0_6 = arith.constant 0 : index
    %c0_7 = arith.constant 0 : index
    %11 = vector.load %arg4[%c0_6, %c0_7] : memref<4x4xf32, #tpu.memory_space<vmem>>, vector<4x4xf32>
    tpu.vector_store %arg4[%c0_6, %c0_7], %10 {strides = array<i32>} : memref<4x4xf32, #tpu.memory_space<vmem>>, vector<4x4xf32>,
    return
  }
  func.func @transform_0(%arg0: i32) -> (i32, i32) {
    %c0_i32 = arith.constant 0 : i32
    %c0_i32_0 = arith.constant 0 : i32
    return %arg0, %c0_i32 : i32, i32
  }
  func.func @transform_1(%arg0: i32) -> (i32, i32) {
    %c0_i32 = arith.constant 0 : i32
    %c0_i32_0 = arith.constant 0 : i32
    %c0_i32_1 = arith.constant 0 : i32
    return %c0_i32, %c0_i32_0 : i32, i32
  }
  func.func @transform_2(%arg0: i32) -> (i32, i32) {
    %c0_i32 = arith.constant 0 : i32
    %c0_i32_0 = arith.constant 0 : i32
    %c0_i32_1 = arith.constant 0 : i32
    return %c0_i32, %c0_i32_0 : i32, i32
  }
  func.func @transform_3(%arg0: i32) -> (i32, i32) {
    %c0_i32 = arith.constant 0 : i32
    %c0_i32_0 = arith.constant 0 : i32
    return %arg0, %c0_i32 : i32, i32
  }
}

</mosaic_0001>

<bundles_post_ra>
// kernel: discriminator_dc_forward.1
= control target key start
LH: loop header
LB: loop body
LE: loop exit
PB: predicated region body
PF: predicated region fallthrough
CT: control target
= control target key end

     0   :  { %v180_v0 = vmov 0.0   ;;  %vm181_vm0 = vmmov 0   ;;  %vm114_vm1 = vcmask 27648   ;;  %s259_s1 = inlined_call_operand.vmem [shape: f32[128,4], index: 1, kind: input, shape index: {}]   ;;  %s260_s0 = inlined_call_operand.vmem [shape: f32[4,128], index: 0, kind: input, shape index: {}]   ;;  %s261_s2 = inlined_call_operand.vmem [shape: f32[1,4], index: 2, kind: input, shape index: {}]   ;;  %s262_s3 = inlined_call_operand.vmem [shape: f32[4,4], index: 3, kind: output, shape index: {}]  }
   0x1   :  { %139 = vmatprep.subr.mxu0 %v180_v0  ;;  %v30_v1 = vld [vmem:[%s259_s1 + $0x78] sm:$0xff]  ;;  %v29_v2 = vld [vmem:[%s259_s1 + $0x70] sm:$0xff]  ;;  %171 = vmatprep.mubr.msk.f32.mxu0 %vm181_vm0, %v180_v0  ;;  %v28_v3 = vld [vmem:[%s259_s1 + $0x68] sm:$0xff] }
   0x2   :  { %140 = vmatpush3.msra.mxu0 %v30_v1  ;;  %v27_v4 = vld [vmem:[%s259_s1 + $0x60] sm:$0xff]  ;;  %v26_v5 = vld [vmem:[%s259_s1 + $0x58] sm:$0xff]  ;;  %v25_v6 = vld [vmem:[%s259_s1 + $0x50] sm:$0xff] }
   0x3   :  { %141 = vmatprep.subr.mxu0 %v180_v0  ;;  %v24_v7 = vld [vmem:[%s259_s1 + $0x48] sm:$0xff]  ;;  %v23_v8 = vld [vmem:[%s259_s1 + $0x40] sm:$0xff]  ;;  %v22_v9 = vld [vmem:[%s259_s1 + $0x38] sm:$0xff] }
   0x4   :  { %142 = vmatpush3.msra.mxu0 %v29_v2  ;;  %v21_v10 = vld [vmem:[%s259_s1 + $0x30] sm:$0xff]  ;;  %v20_v11 = vld [vmem:[%s259_s1 + $0x28] sm:$0xff]  ;;  %v19_v12 = vld [vmem:[%s259_s1 + $0x20] sm:$0xff] }
   0x5   :  { %143 = vmatprep.subr.mxu0 %v180_v0  ;;  %v18_v13 = vld [vmem:[%s259_s1 + $0x18] sm:$0xff]  ;;  %v17_v14 = vld [vmem:[%s259_s1 + $0x10] sm:$0xff]  ;;  %v16_v15 = vld [vmem:[%s259_s1 + $0x8] sm:$0xff] }
   0x6   :  { %144 = vmatpush3.msra.mxu0 %v28_v3  ;;  %v15_v16 = vld [vmem:[%s259_s1] sm:$0xff] }
   0x7   :  { %145 = vmatprep.subr.mxu0 %v180_v0  ;;  %v14_v17 = vld [vmem:[%s260_s0] sm:$0xf] }
   0x8   :  { %146 = vmatpush3.msra.mxu0 %v27_v4  ;;  %v120_v18 = vld [vmem:[%s261_s2] ss:$0 sm:$0xff] }
   0x9   :  { %147 = vmatprep.subr.mxu0 %v180_v0 }
   0xa   :  { %148 = vmatpush3.msra.mxu0 %v26_v5 }
   0xb   :  { %149 = vmatprep.subr.mxu0 %v180_v0 }
   0xc   :  { %150 = vmatpush3.msra.mxu0 %v25_v6 }
   0xd   :  { %151 = vmatprep.subr.mxu0 %v180_v0 }
   0xe   :  { %152 = vmatpush3.msra.mxu0 %v24_v7 }
   0xf   :  { %153 = vmatprep.subr.mxu0 %v180_v0 }
  0x10   :  { %154 = vmatpush3.msra.mxu0 %v23_v8 }
  0x11   :  { %155 = vmatprep.subr.mxu0 %v180_v0 }
  0x12   :  { %156 = vmatpush3.msra.mxu0 %v22_v9 }
  0x13   :  { %157 = vmatprep.subr.mxu0 %v180_v0 }
  0x14   :  { %158 = vmatpush3.msra.mxu0 %v21_v10 }
  0x15   :  { %159 = vmatprep.subr.mxu0 %v180_v0 }
  0x16   :  { %160 = vmatpush3.msra.mxu0 %v20_v11 }
  0x17   :  { %161 = vmatprep.subr.mxu0 %v180_v0 }
  0x18   :  { %162 = vmatpush3.msra.mxu0 %v19_v12 }
  0x19   :  { %163 = vmatprep.subr.mxu0 %v180_v0 }
  0x1a   :  { %164 = vmatpush3.msra.mxu0 %v18_v13 }
  0x1b   :  { %165 = vmatprep.subr.mxu0 %v180_v0 }
  0x1c   :  { %166 = vmatpush3.msra.mxu0 %v17_v14 }
  0x1d   :  { %167 = vmatprep.subr.mxu0 %v180_v0 }
  0x1e   :  { %168 = vmatpush3.msra.mxu0 %v16_v15 }
  0x1f   :  { %169 = vmatprep.subr.mxu0 %v180_v0 }
  0x20   :  { %170 = vmatpush3.msra.mxu0 %v15_v16 }
  0x21   :  { %172 = vmatmul.mubr.f32.vlgmr.msra.gmra.mxu0 %v14_v17 }
  0xe1   :  { %v104_v19 = vpop.f32.mrf.mxu0 }
  0xe2   :  { %v105_v20 = vadd.f32 %v120_v18, %v104_v19 }
  0xe3   :  { %v173_v21 = vpop.f32.mrf.mxu0 }
  0xe4   :  { %v121_v22 = vmul.f32 -1.442695, %v105_v20 }
  0xe6   :  { %176 = vpow2.f32 %v121_v22 }
  0xf3   :  { %v177_v23 = vpop.eup %176 }
  0xf4   :  { %v111_v24 = vadd.f32 1.0, %v177_v23 }
  0xf6   :  { %178 = vrcp.f32 %v111_v24 }
 0x103   :  { %v179_v25 = vpop.eup %178 }
 0x104   :  { %115 = vst.msk [vmem:[%s262_s3] sm:$0xf] %vm114_vm1, %v179_v25 }

</bundles_post_ra>
